<compile_context>
chip_gen: v5e
topology: v5e:2x2
jax: 0.10.0
libtpu: 0.0.40
codegen_flags: <defaults>
</compile_context>

<pallas_src>
import jax
import jax.numpy as jnp
from jax.experimental import pallas as pl
from jax.experimental.pallas import tpu as pltpu


# ----------------------------------------------------------------------------
# Pallas kernel
# ----------------------------------------------------------------------------

def _lem_kernel(scale_ref, img_ref, o_ref, xpad_ref):
    """Fused log-normalize + separable Sobel-H/V + magnitude for B_TILE images.

    scale_ref: (1, 1) f32 in SMEM, holds 0.25 / log(1 + max(img))
    img_ref  : (B, H, W)      f32 VMEM block (raw, unpadded images)
    o_ref    : (B, H, W)      f32 VMEM block
    xpad_ref : (B, H+2, W+2)  f32 VMEM scratch (zero-padded, log-normalized images)
    """
    b, h, w = o_ref.shape
    scale = scale_ref[0, 0]

    # Build the zero-padded, log-normalized image in VMEM.  Zeroing the whole scratch every
    # iteration keeps the halo correct without any cross-iteration / cross-core assumptions
    # (scratch is per-core under megacore sharding); the interior is then overwritten.
    # Padding zeros are exactly equivalent to conv padding=1 on x since log(0 + 1) = 0.
    xpad_ref[...] = jnp.zeros_like(xpad_ref)
    xpad_ref[:, 1:h + 1, 1:w + 1] = jnp.log(img_ref[...] + 1.0) * scale

    x = xpad_ref[...]                                   # (B, H+2, W+2)

    # Separable Sobel (PyTorch conv2d is cross-correlation; /4 folded into `scale`).
    top = x[:, 0:h, :]
    mid = x[:, 1:h + 1, :]
    bot = x[:, 2:h + 2, :]
    t1 = top - bot                                      # vertical difference   -> edge_H
    t2 = top + 2.0 * mid + bot                          # vertical smoothing    -> edge_V

    gh = t1[:, :, 0:w] + 2.0 * t1[:, :, 1:w + 1] + t1[:, :, 2:w + 2]
    gv = t2[:, :, 0:w] - t2[:, :, 2:w + 2]

    o_ref[...] = jnp.sqrt(gh * gh + gv * gv).astype(o_ref.dtype)


# ----------------------------------------------------------------------------
# Wrapper
# ----------------------------------------------------------------------------

def lem_forward(img, *, vmem_budget_bytes=48 * 1024 * 1024):
    """img: (N, 1, H, W) -> (N, 1, H, W) edge magnitude, matching LEM.forward."""
    n, c, h, w = img.shape
    assert c == 1, "LEM's Sobel weights are single-channel (shape (1, 1, 3, 3))."
    img = img.astype(jnp.float32)
    img2d = img[:, 0]                                   # (N, H, W)

    # Global-max normalizer: tiny full-tensor reduction, left to XLA (glue).
    # The Sobel /4 is folded into the same scalar so the kernel does a single multiply.
    scale = (0.25 / jnp.log(1.0 + jnp.max(img2d))).reshape(1, 1).astype(jnp.float32)

    # Pick B_TILE = largest divisor of N whose per-step VMEM footprint fits the budget.
    # Rough footprint per image: 2x input buf + 2x output buf + padded scratch + ~6 f32
    # intermediates (t1/t2/gh/gv/log temp) ~= 11 * H*W * 4 bytes.
    per_image_bytes = 11 * h * w * 4
    max_b = max(1, vmem_budget_bytes // max(per_image_bytes, 1))
    b_tile = 1
    for d in range(1, n + 1):
        if n % d == 0 and d <= max_b:
            b_tile = d
    grid = (n // b_tile,)

    vmem_limit = int(min(100 * 1024 * 1024,
                         max(32 * 1024 * 1024, int(1.5 * b_tile * per_image_bytes))))

    out = pl.pallas_call(
        _lem_kernel,
        out_shape=jax.ShapeDtypeStruct((n, h, w), jnp.float32),
        grid=grid,
        in_specs=[
            pl.BlockSpec(memory_space=pltpu.MemorySpace.SMEM),        # scale (1, 1)
            pl.BlockSpec((b_tile, h, w), lambda i: (i, 0, 0)),        # raw images (no HBM pad)
        ],
        out_specs=pl.BlockSpec((b_tile, h, w), lambda i: (i, 0, 0)),
        scratch_shapes=[pltpu.VMEM((b_tile, h + 2, w + 2), jnp.float32)],
        compiler_params=pltpu.CompilerParams(
            dimension_semantics=("parallel",),
            vmem_limit_bytes=vmem_limit,
        ),
    )(scale, img2d)

    return out[:, None, :, :]                                         # (N, 1, H, W)


# ----------------------------------------------------------------------------
# Pure-JAX reference (same math, no Pallas) for a correctness check
# ----------------------------------------------------------------------------

def lem_reference(img):
    img = img.astype(jnp.float32)
    x = jnp.log(img + 1.0) / jnp.log(1.0 + jnp.max(img))
    xp = jnp.pad(x, ((0, 0), (0, 0), (1, 1), (1, 1)))
    h, w = img.shape[2], img.shape[3]

    def tap(dy, dx):
        return xp[:, :, dy:dy + h, dx:dx + w]

    gh = (tap(0, 0) + 2.0 * tap(0, 1) + tap(0, 2)
          - tap(2, 0) - 2.0 * tap(2, 1) - tap(2, 2)) / 4.0
    gv = (tap(0, 0) + 2.0 * tap(1, 0) + tap(2, 0)
          - tap(0, 2) - 2.0 * tap(1, 2) - tap(2, 2)) / 4.0
    return jnp.sqrt(gh * gh + gv * gv)


# ----------------------------------------------------------------------------
# Main
# ----------------------------------------------------------------------------

if __name__ == "__main__":
    batch, chans, height, width = 2, 1, 16, 16

    key = jax.random.PRNGKey(0)
    # Non-negative "image" input (the reference model operates on images).
    img = jax.random.uniform(key, (batch, chans, height, width), jnp.float32)

    fwd = jax.jit(lem_forward)
    y = jax.block_until_ready(fwd(img))

    assert y.shape == (batch, chans, height, width), y.shape
    assert jnp.all(jnp.isfinite(y)), "non-finite output"

    y_ref = lem_reference(img)
    assert jnp.allclose(y, y_ref, atol=1e-4, rtol=1e-4), (
        float(jnp.max(jnp.abs(y - y_ref))))

    print("KERNEL_OK")
</pallas_src>

<mosaic_0001>
module attributes {stable_mosaic.version = 11 : i64} {
  func.func @_lem_kernel(%arg0: i32, %arg1: memref<1x1xf32, #tpu.memory_space<smem>>, %arg2: memref<2x16x16xf32, #tpu.memory_space<vmem>>, %arg3: memref<2x16x16xf32, #tpu.memory_space<vmem>>, %arg4: memref<2x18x18xf32, #tpu.memory_space<vmem>>) attributes {dimension_semantics = [#tpu.dimension_semantics<parallel>], iteration_bounds = array<i64: 1>, scalar_prefetch = 0 : i64, scratch_operands = 1 : i64, tpu.core_type = #tpu.core_type<tc>, window_params = [{transform_indices = @transform_0, window_bounds = array<i64: 1, 1>}, {transform_indices = @transform_1, window_bounds = array<i64: 2, 16, 16>}, {transform_indices = @transform_2, window_bounds = array<i64: 2, 16, 16>}]} {
    %c0 = arith.constant 0 : index
    %c0_0 = arith.constant 0 : index
    %0 = memref.load %arg1[%c0, %c0_0] : memref<1x1xf32, #tpu.memory_space<smem>>
    %cst = arith.constant 0.000000e+00 : f32
    %1 = vector.broadcast %cst : f32 to vector<2x18x18xf32>
    %c0_1 = arith.constant 0 : index
    %c0_2 = arith.constant 0 : index
    %c0_3 = arith.constant 0 : index
    %2 = vector.load %arg4[%c0_1, %c0_2, %c0_3] : memref<2x18x18xf32, #tpu.memory_space<vmem>>, vector<2x18x18xf32>
    tpu.vector_store %arg4[%c0_1, %c0_2, %c0_3], %1 {strides = array<i32>} : memref<2x18x18xf32, #tpu.memory_space<vmem>>, vector<2x18x18xf32>,
    %c0_4 = arith.constant 0 : index
    %c0_5 = arith.constant 0 : index
    %c0_6 = arith.constant 0 : index
    %3 = vector.load %arg2[%c0_4, %c0_5, %c0_6] : memref<2x16x16xf32, #tpu.memory_space<vmem>>, vector<2x16x16xf32>
    %cst_7 = arith.constant 1.000000e+00 : f32
    %4 = vector.broadcast %cst_7 : f32 to vector<2x16x16xf32>
    %5 = arith.addf %3, %4 : vector<2x16x16xf32>
    %6 = math.log %5 : vector<2x16x16xf32>
    %7 = vector.broadcast %0 : f32 to vector<2x16x16xf32>
    %8 = arith.mulf %6, %7 : vector<2x16x16xf32>
    %c0_8 = arith.constant 0 : index
    %c1 = arith.constant 1 : index
    %c1_9 = arith.constant 1 : index
    %9 = vector.load %arg4[%c0_8, %c1, %c1_9] : memref<2x18x18xf32, #tpu.memory_space<vmem>>, vector<2x16x16xf32>
    tpu.vector_store %arg4[%c0_8, %c1, %c1_9], %8 {strides = array<i32>} : memref<2x18x18xf32, #tpu.memory_space<vmem>>, vector<2x16x16xf32>,
    %c0_10 = arith.constant 0 : index
    %c0_11 = arith.constant 0 : index
    %c0_12 = arith.constant 0 : index
    %10 = vector.load %arg4[%c0_10, %c0_11, %c0_12] : memref<2x18x18xf32, #tpu.memory_space<vmem>>, vector<2x18x18xf32>
    %11 = vector.extract_strided_slice %10 {offsets = [0, 0, 0], sizes = [2, 16, 18], strides = [1, 1, 1]} : vector<2x18x18xf32> to vector<2x16x18xf32>
    %12 = vector.extract_strided_slice %10 {offsets = [0, 1, 0], sizes = [2, 16, 18], strides = [1, 1, 1]} : vector<2x18x18xf32> to vector<2x16x18xf32>
    %13 = vector.extract_strided_slice %10 {offsets = [0, 2, 0], sizes = [2, 16, 18], strides = [1, 1, 1]} : vector<2x18x18xf32> to vector<2x16x18xf32>
    %14 = arith.subf %11, %13 : vector<2x16x18xf32>
    %cst_13 = arith.constant 2.000000e+00 : f32
    %15 = vector.broadcast %cst_13 : f32 to vector<2x16x18xf32>
    %16 = arith.mulf %15, %12 : vector<2x16x18xf32>
    %17 = arith.addf %11, %16 : vector<2x16x18xf32>
    %18 = arith.addf %17, %13 : vector<2x16x18xf32>
    %19 = vector.extract_strided_slice %14 {offsets = [0, 0, 0], sizes = [2, 16, 16], strides = [1, 1, 1]} : vector<2x16x18xf32> to vector<2x16x16xf32>
    %20 = vector.extract_strided_slice %14 {offsets = [0, 0, 1], sizes = [2, 16, 16], strides = [1, 1, 1]} : vector<2x16x18xf32> to vector<2x16x16xf32>
    %cst_14 = arith.constant 2.000000e+00 : f32
    %21 = vector.broadcast %cst_14 : f32 to vector<2x16x16xf32>
    %22 = arith.mulf %21, %20 : vector<2x16x16xf32>
    %23 = arith.addf %19, %22 : vector<2x16x16xf32>
    %24 = vector.extract_strided_slice %14 {offsets = [0, 0, 2], sizes = [2, 16, 16], strides = [1, 1, 1]} : vector<2x16x18xf32> to vector<2x16x16xf32>
    %25 = arith.addf %23, %24 : vector<2x16x16xf32>
    %26 = vector.extract_strided_slice %18 {offsets = [0, 0, 0], sizes = [2, 16, 16], strides = [1, 1, 1]} : vector<2x16x18xf32> to vector<2x16x16xf32>
    %27 = vector.extract_strided_slice %18 {offsets = [0, 0, 2], sizes = [2, 16, 16], strides = [1, 1, 1]} : vector<2x16x18xf32> to vector<2x16x16xf32>
    %28 = arith.subf %26, %27 : vector<2x16x16xf32>
    %29 = arith.mulf %25, %25 : vector<2x16x16xf32>
    %30 = arith.mulf %28, %28 : vector<2x16x16xf32>
    %31 = arith.addf %29, %30 : vector<2x16x16xf32>
    %32 = math.sqrt %31 : vector<2x16x16xf32>
    %c0_15 = arith.constant 0 : index
    %c0_16 = arith.constant 0 : index
    %c0_17 = arith.constant 0 : index
    %33 = vector.load %arg3[%c0_15, %c0_16, %c0_17] : memref<2x16x16xf32, #tpu.memory_space<vmem>>, vector<2x16x16xf32>
    tpu.vector_store %arg3[%c0_15, %c0_16, %c0_17], %32 {strides = array<i32>} : memref<2x16x16xf32, #tpu.memory_space<vmem>>, vector<2x16x16xf32>,
    return
  }
  func.func @transform_0(%arg0: i32) -> (i32, i32) {
    %c0_i32 = arith.constant 0 : i32
    %c0_i32_0 = arith.constant 0 : i32
    %c0_i32_1 = arith.constant 0 : i32
    return %c0_i32, %c0_i32_0 : i32, i32
  }
  func.func @transform_1(%arg0: i32) -> (i32, i32, i32) {
    %c0_i32 = arith.constant 0 : i32
    %c0_i32_0 = arith.constant 0 : i32
    %c0_i32_1 = arith.constant 0 : i32
    return %arg0, %c0_i32, %c0_i32_0 : i32, i32, i32
  }
  func.func @transform_2(%arg0: i32) -> (i32, i32, i32) {
    %c0_i32 = arith.constant 0 : i32
    %c0_i32_0 = arith.constant 0 : i32
    %c0_i32_1 = arith.constant 0 : i32
    return %arg0, %c0_i32, %c0_i32_0 : i32, i32, i32
  }
}

</mosaic_0001>

<bundles_post_ra>
// kernel: lem_forward.1
= control target key start
LH: loop header
LB: loop body
LE: loop exit
PB: predicated region body
PF: predicated region fallthrough
CT: control target
= control target key end

     0   :  { %s391_s0 = inlined_call_operand.<no memory space> [shape: f32[1,1], index: 0, kind: input, shape index: {}]   ;;  %s392_s1 = inlined_call_operand.vmem [shape: f32[2,16,16], index: 1, kind: input, shape index: {}]   ;;  %s393_s2 = inlined_call_operand.hbm [shape: f32[2,16,16], index: 2, kind: output, shape index: {}]  }
   0x1   :  { %v24_v0 = vld [vmem:[%s392_s1 + $0x10] sm:$0xff]  ;;  %v22_v1 = vld [vmem:[%s392_s1] sm:$0xff]  ;;  %v25_v2 = vld [vmem:[%s392_s1 + $0x18] sm:$0xff] }
   0x2   :  { %v28_v3 = vadd.f32 1.0, %v24_v0  ;;  %v26_v4 = vadd.f32 1.0, %v22_v1  ;;  %v29_v5 = vadd.f32 1.0, %v25_v2  ;;  %v23_v6 = vld [vmem:[%s392_s1 + $0x8] sm:$0xff] }
   0x3   :  { %8 = vsyncpa [#allocation5], 0  ;;  %v27_v7 = vadd.f32 1.0, %v23_v6  ;;  %v38_v9 = vstv %s391_s0  ;;  %s326_s19 = smov 1   ;;  %vm14_vm0 = vcmask 146432   ;;  %v327_v21 = vmov 0.0  }
   0x4   :  { %284 = vlog2.f32 %v28_v3  ;;  %19 = vst.msk [vmem:[#allocation2 + $0x18] sm:$0xff] %vm14_vm0, %v327_v21  ;;  %vm17_vm1 = vcmask 140288   ;;  %vm59_vm2 = vcmask 138248   ;;  %vm76_vm3 = vcmask 1045504   ;;  %s328_s0 = smov 126   ;;  %s329_s1 = smov 127  }
   0x5   :  { %286 = vlog2.f32 %v26_v4  ;;  %20 = vst.msk [vmem:[#allocation2 + $0x20] sm:$0xff] %vm14_vm0, %v327_v21  ;;  %vm107_vm4 = vcmask 1046528   ;;  %vm254_vm6 = vcmask 130048   ;;  %s330_s20 = smov [#allocation4]   ;;  %s265_s24 = sshll.u32 %s393_s2, 4  ;;  %s266_s24 = int_to_ptr.hbm [resolvable:$true] %s265_s24 }
   0x6   :  { %288 = vlog2.f32 %v29_v5  ;;  %15 = vst.msk [vmem:[#allocation2] sm:$0xff] %vm14_vm0, %v327_v21  ;;  %s263_s21 = sshll.u32 %s330_s20, 4  ;;  %s331_s25 = smov 128   ;;  %s264_s21 = int_to_ptr.vmem [resolvable:$true] %s263_s21 }
   0x7   :  { %290 = vlog2.f32 %v27_v7  ;;  %16 = vst.msk [vmem:[#allocation2 + $0x8] sm:$0xff] %vm14_vm0, %v327_v21  ;;  %s332_s26 = smov 8  }
   0x8   :  { %21 = vst.msk [vmem:[#allocation2 + $0x28] sm:$0x3] %vm17_vm1, %v327_v21 }
   0x9   :  { %18 = vst.msk [vmem:[#allocation2 + $0x10] sm:$0x3] %vm17_vm1, %v327_v21 }
   0xa   :  { %v285_v8 = vpop.eup %284 }
   0xb   :  { %v287_v10 = vpop.eup %286  ;;  %v35_v11 = vmul.f32 0.6931472, %v285_v8 }
   0xc   :  { %v289_v12 = vpop.eup %288  ;;  %v31_v13 = vmul.f32 0.6931472, %v287_v10 }
   0xd   :  { %v291_v14 = vpop.eup %290  ;;  %v41_v15 = vmul.f32 %v38_v9, %v35_v11  ;;  %v37_v17 = vmul.f32 0.6931472, %v289_v12 }
   0xe   :  { %v39_v16 = vmul.f32 %v38_v9, %v31_v13  ;;  %v33_v18 = vmul.f32 0.6931472, %v291_v14 }
   0xf   :  { %51 = vrot.lane.b32.xlu1 %v41_v15, %s326_s19  ;;  %v42_v19 = vmul.f32 %v38_v9, %v37_v17 }
  0x10   :  { %47 = vrot.lane.b32.xlu0 %v39_v16, %s326_s19  ;;  %v40_v20 = vmul.f32 %v38_v9, %v33_v18 }
  0x17   :  { %53 = vrot.lane.b32.xlu1 %v42_v19, %s326_s19 }
  0x18   :  { %49 = vrot.lane.b32.xlu0 %v40_v20, %s326_s19 }
  0x81   :  { %v52_v22 = vpop.permute.xlu1 %51 }
  0x82   :  { %62 = vst.msk [vmem:[#allocation2 + $0x19] sm:$0xff] %vm59_vm2, %v52_v22  ;;  %v48_v23 = vpop.permute.xlu0 %47 }
  0x83   :  { %60 = vst.msk [vmem:[#allocation2 + $0x1] sm:$0xff] %vm59_vm2, %v48_v23 }
  0x89   :  { %v54_v24 = vpop.permute.xlu1 %53  ;;  %v67_v26 = vld [vmem:[#allocation2 + $0x18] sm:$0xff] }
  0x8a   :  { %63 = vst.msk [vmem:[#allocation2 + $0x21] sm:$0xff] %vm59_vm2, %v54_v24  ;;  %v50_v25 = vpop.permute.xlu0 %49  ;;  %v64_v27 = vld [vmem:[#allocation2] sm:$0xff]  ;;  %v82_v30 = vrot.slane %v67_v26, 2  ;;  %v98_v2 = vmul.f32 2.0, %v67_v26 }
  0x8b   :  { %61 = vst.msk [vmem:[#allocation2 + $0x9] sm:$0xff] %vm59_vm2, %v50_v25  ;;  %v77_v37 = vrot.slane %v64_v27, 2  ;;  %v95_v48 = vmul.f32 2.0, %v64_v27 }
  0x8c   :  { %v113_v4 = vrot.slane %v98_v2, 1 }
  0x8d   :  { %v108_v52 = vrot.slane %v95_v48, 1 }
  0x91   :  { %v68_v28 = vld [vmem:[#allocation2 + $0x20] sm:$0xff]  ;;  %v69_v29 = vld [vmem:[#allocation2 + $0x28] sm:$0x3] }
  0x92   :  { %v83_v31 = vrot.slane %v68_v28, 2  ;;  %v65_v32 = vld [vmem:[#allocation2 + $0x8] sm:$0xff]  ;;  %v66_v33 = vld [vmem:[#allocation2 + $0x10] sm:$0x3]  ;;  %v85_v34 = vrot.slane %v69_v29, 2  ;;  %v99_v56 = vmul.f32 2.0, %v68_v28 }
  0x93   :  { %v78_v35 = vrot.slane %v65_v32, 2  ;;  %v80_v36 = vrot.slane %v66_v33, 2  ;;  %v97_v41 = vmul.f32 2.0, %v66_v33  ;;  %v96_v46 = vmul.f32 2.0, %v65_v32 }
  0x94   :  { %v84_v38 = vsel %vm76_vm3, %v82_v30, %v83_v31  ;;  %v86_v45 = vsel %vm76_vm3, %v83_v31, %v85_v34  ;;  %v100_v57 = vmul.f32 2.0, %v69_v29  ;;  %v114_v60 = vrot.slane %v99_v56, 1 }
  0x95   :  { %v93_v39 = vsub.f32 %v67_v26, %v84_v38  ;;  %v81_v40 = vsel %vm76_vm3, %v78_v35, %v80_v36  ;;  %v79_v42 = vsel %vm76_vm3, %v77_v37, %v78_v35  ;;  %v370_v47 = vsub.f32 %v68_v28, %v86_v45 }
  0x96   :  { %v92_v43 = vsub.f32 %v65_v32, %v81_v40  ;;  %v91_v44 = vsub.f32 %v64_v27, %v79_v42  ;;  %v109_v49 = vrot.slane %v96_v46, 1  ;;  %v111_v50 = vrot.slane %v97_v41, 1 }
  0x97   :  { %162 = vrot.lane.b32.xlu1 %v93_v39, %s328_s0  ;;  %v133_v51 = vmul.f32 2.0, %v370_v47  ;;  %v132_v53 = vmul.f32 2.0, %v93_v39  ;;  %v116_v61 = vrot.slane %v100_v57, 1  ;;  %v115_v7 = vsel %vm107_vm4, %v113_v4, %v114_v60 }
  0x98   :  { %160 = vrot.lane.b32.xlu0 %v92_v43, %s328_s0  ;;  %158 = vrot.lane.b32.xlu2 %v91_v44, %s328_s0  ;;  %v112_v54 = vsel %vm107_vm4, %v109_v49, %v111_v50  ;;  %v110_v55 = vsel %vm107_vm4, %v108_v52, %v109_v49  ;;  %v130_v0 = vmul.f32 2.0, %v91_v44  ;;  %v131_v6 = vmul.f32 2.0, %v92_v43 }
  0x99   :  { %v123_v58 = vadd.f32 %v112_v54, %v65_v32  ;;  %v122_v59 = vadd.f32 %v110_v55, %v64_v27  ;;  %v117_v1 = vsel %vm107_vm4, %v114_v60, %v116_v61  ;;  %v124_v8 = vadd.f32 %v115_v7, %v67_v26 }
  0x9a   :  { %v125_v3 = vadd.f32 %v117_v1, %v68_v28 }
  0x9b   :  { %v127_v62 = vadd.f32 %v123_v58, %v81_v40  ;;  %v126_v63 = vadd.f32 %v122_v59, %v79_v42  ;;  %v128_v9 = vadd.f32 %v124_v8, %v84_v38 }
  0x9c   :  { %v129_v5 = vadd.f32 %v125_v3, %v86_v45 }
  0x9f   :  { %144 = vrot.lane.b32.xlu1 %v133_v51, %s329_s1 }
  0xa0   :  { %142 = vrot.lane.b32.xlu0 %v132_v53, %s329_s1  ;;  %164 = vrot.lane.b32.xlu2 %v370_v47, %s328_s0 }
  0xa7   :  { %180 = vrot.lane.b32.xlu1 %v127_v62, %s328_s0 }
  0xa8   :  { %178 = vrot.lane.b32.xlu0 %v126_v63, %s328_s0  ;;  %138 = vrot.lane.b32.xlu2 %v130_v0, %s329_s1 }
  0xb0   :  { %184 = vrot.lane.b32.xlu0 %v129_v5, %s328_s0  ;;  %140 = vrot.lane.b32.xlu2 %v131_v6, %s329_s1 }
  0xb8   :  { %182 = vrot.lane.b32.xlu2 %v128_v9, %s328_s0 }
  0xf2   :  { %v159_v10 = vpop.permute.xlu2 %158 }
  0xfa   :  { %v165_v11 = vpop.permute.xlu2 %164 }
 0x102   :  { %v139_v12 = vpop.permute.xlu2 %138 }
 0x103   :  { %v150_v22 = vadd.f32 %v139_v12, %v91_v44 }
 0x105   :  { %v170_v27 = vadd.f32 %v159_v10, %v150_v22 }
 0x107   :  { %v194_v35 = vmul.f32 %v170_v27, %v170_v27 }
 0x109   :  { %v163_v13 = vpop.permute.xlu1 %162 }
 0x10a   :  { %v161_v14 = vpop.permute.xlu0 %160  ;;  %v141_v15 = vpop.permute.xlu2 %140 }
 0x10b   :  { %v151_v21 = vadd.f32 %v141_v15, %v92_v43 }
 0x10d   :  { %v171_v26 = vadd.f32 %v161_v14, %v151_v21 }
 0x10f   :  { %v195_v33 = vmul.f32 %v171_v26, %v171_v26 }
 0x111   :  { %v145_v16 = vpop.permute.xlu1 %144 }
 0x112   :  { %v143_v17 = vpop.permute.xlu0 %142  ;;  %v183_v18 = vpop.permute.xlu2 %182  ;;  %v153_v36 = vadd.f32 %v145_v16, %v370_v47 }
 0x113   :  { %v152_v19 = vadd.f32 %v143_v17, %v93_v39  ;;  %v192_v20 = vsub.f32 %v128_v9, %v183_v18 }
 0x114   :  { %v173_v41 = vadd.f32 %v165_v11, %v153_v36 }
 0x115   :  { %v172_v23 = vadd.f32 %v163_v13, %v152_v19  ;;  %v200_v25 = vmul.f32 %v192_v20, %v192_v20 }
 0x116   :  { %v197_v46 = vmul.f32 %v173_v41, %v173_v41 }
 0x117   :  { %v196_v24 = vmul.f32 %v172_v23, %v172_v23 }
 0x119   :  { %v204_v28 = vadd.f32 %v200_v25, %v196_v24  ;;  %v181_v29 = vpop.permute.xlu1 %180 }
 0x11a   :  { %v191_v30 = vsub.f32 %v127_v62, %v181_v29  ;;  %v179_v31 = vpop.permute.xlu0 %178 }
 0x11b   :  { %292 = vrsqrt.f32 %v204_v28  ;;  %v190_v32 = vsub.f32 %v126_v63, %v179_v31  ;;  %vm237_vm5 = vcmp.eq.f32.partialorder %v204_v28, inf  ;;  %v240_v62 = vand.u32 2147483648, %v204_v28 }
 0x11c   :  { %v199_v34 = vmul.f32 %v191_v30, %v191_v30  ;;  %vm239_vm7 = vcmp.eq.f32.partialorder %v204_v28, 0.0 }
 0x11d   :  { %v198_v37 = vmul.f32 %v190_v32, %v190_v32 }
 0x11e   :  { %v203_v38 = vadd.f32 %v199_v34, %v195_v33 }
 0x11f   :  { %v202_v39 = vadd.f32 %v198_v37, %v194_v35 }
 0x120   :  { %294 = vrsqrt.f32 %v203_v38  ;;  %vm225_vm8 = vcmp.eq.f32.partialorder %v203_v38, inf  ;;  %v228_v9 = vand.u32 2147483648, %v203_v38  ;;  %vm227_vm10 = vcmp.eq.f32.partialorder %v203_v38, 0.0 }
 0x121   :  { %v293_v40 = vpop.eup %292  ;;  %296 = vrsqrt.f32 %v202_v39  ;;  %vm213_vm9 = vcmp.eq.f32.partialorder %v202_v39, inf  ;;  %v216_v10 = vand.u32 2147483648, %v202_v39  ;;  %vm215_vm11 = vcmp.eq.f32.partialorder %v202_v39, 0.0 }
 0x122   :  { %v231_v42 = vmul.f32 %v293_v40, %v204_v28  ;;  %v185_v43 = vpop.permute.xlu0 %184 }
 0x123   :  { %v193_v44 = vsub.f32 %v129_v5, %v185_v43 }
 0x124   :  { %v232_v45 = vmul.f32 %v293_v40, %v231_v42 }
 0x125   :  { %v201_v48 = vmul.f32 %v193_v44, %v193_v44 }
 0x126   :  { %v295_v49 = vpop.eup %294  ;;  %v233_v50 = vmul.f32 0.5, %v232_v45 }
 0x127   :  { %v297_v51 = vpop.eup %296  ;;  %v219_v52 = vmul.f32 %v295_v49, %v203_v38  ;;  %v205_v53 = vadd.f32 %v201_v48, %v197_v46 }
 0x128   :  { %v234_v54 = vsub.f32 1.5, %v233_v50  ;;  %v207_v47 = vmul.f32 %v297_v51, %v202_v39 }
 0x129   :  { %v220_v55 = vmul.f32 %v295_v49, %v219_v52  ;;  %298 = vrsqrt.f32 %v205_v53  ;;  %vm249_vm12 = vcmp.eq.f32.partialorder %v205_v53, inf  ;;  %v252_v19 = vand.u32 2147483648, %v205_v53 }
 0x12a   :  { %v208_v56 = vmul.f32 %v297_v51, %v207_v47  ;;  %v235_v57 = vmul.f32 %v293_v40, %v234_v54  ;;  %vm251_vm13 = vcmp.eq.f32.partialorder %v205_v53, 0.0 }
 0x12b   :  { %v221_v58 = vmul.f32 0.5, %v220_v55 }
 0x12c   :  { %v209_v59 = vmul.f32 0.5, %v208_v56  ;;  %v236_v60 = vmul.f32 %v235_v57, %v204_v28 }
 0x12d   :  { %v222_v61 = vsub.f32 1.5, %v221_v58 }
 0x12e   :  { %v210_v63 = vsub.f32 1.5, %v209_v59  ;;  %v238_v0 = vsel %vm237_vm5, %v204_v28, %v236_v60 }
 0x12f   :  { %v299_v1 = vpop.eup %298  ;;  %v223_v2 = vmul.f32 %v295_v49, %v222_v61  ;;  %v241_v3 = vsel %vm239_vm7, %v240_v62, %v238_v0 }
 0x130   :  { %v243_v4 = vmul.f32 %v299_v1, %v205_v53  ;;  %v211_v5 = vmul.f32 %v297_v51, %v210_v63  ;;  %257 = vst.msk [vmem:[#allocation4 + $0x10] sm:$0xff] %vm254_vm6, %v241_v3 }
 0x131   :  { %v224_v6 = vmul.f32 %v223_v2, %v203_v38 }
 0x132   :  { %v244_v7 = vmul.f32 %v299_v1, %v243_v4  ;;  %v212_v8 = vmul.f32 %v211_v5, %v202_v39 }
 0x133   :  { %v226_v11 = vsel %vm225_vm8, %v203_v38, %v224_v6 }
 0x134   :  { %v245_v12 = vmul.f32 0.5, %v244_v7  ;;  %v214_v13 = vsel %vm213_vm9, %v202_v39, %v212_v8  ;;  %v229_v14 = vsel %vm227_vm10, %v228_v9, %v226_v11 }
 0x135   :  { %v217_v15 = vsel %vm215_vm11, %v216_v10, %v214_v13  ;;  %256 = vst.msk [vmem:[#allocation4 + $0x8] sm:$0xff] %vm254_vm6, %v229_v14 }
 0x136   :  { %v246_v16 = vsub.f32 1.5, %v245_v12  ;;  %255 = vst.msk [vmem:[#allocation4] sm:$0xff] %vm254_vm6, %v217_v15 }
 0x138   :  { %v247_v17 = vmul.f32 %v299_v1, %v246_v16 }
 0x13a   :  { %v248_v18 = vmul.f32 %v247_v17, %v205_v53 }
 0x13c   :  { %v250_v20 = vsel %vm249_vm12, %v205_v53, %v248_v18 }
 0x13d   :  { %v253_v21 = vsel %vm251_vm13, %v252_v19, %v250_v20 }
 0x13e   :  { %258 = vst.msk [vmem:[#allocation4 + $0x18] sm:$0xff] %vm254_vm6, %v253_v21 }
 0x13f   :  { %271 = dma.vmem_to_hbm [thread:$0]  %s264_s21, 512, %s266_s24, [#allocation5], %s331_s25, %s331_s25, %s332_s26  }
 0x140   :  { %324 = dma.done.wait [#allocation5], 512  }
 0x141   :  { %325 = vsyncadd [#allocation5], 4294966784 }
 0x142   :  { %276 = vsyncpa [#allocation5], 1 }

</bundles_post_ra>
